<compile_context>
chip_gen: v5e
topology: v5e:2x2
jax: 0.10.0
libtpu: 0.0.40
codegen_flags: <defaults>
</compile_context>

<pallas_src>
import jax
import jax.numpy as jnp
from jax.experimental import pallas as pl
from jax.experimental.pallas import tpu as pltpu


def _prefix_copy_kernel(table_ref, out_ref, sem):
    # table_ref: (max_seq_len, dim) raw HBM ref;  out_ref: (seq_len, dim) raw HBM ref.
    # arange(seq_len) lookup == contiguous prefix -> one DMA descriptor, no compute.
    seq_len = out_ref.shape[0]
    cp = pltpu.make_async_copy(table_ref.at[pl.ds(0, seq_len)], out_ref, sem)
    cp.start()
    cp.wait()


def positional_embedding_forward(x, emb_table):
    """Equivalent of PositionalEmbedding.forward(x): emb_table[arange(x.shape[1])]."""
    seq_len = x.shape[1]
    max_seq_len, dim = emb_table.shape
    assert seq_len <= max_seq_len

    itemsize = jnp.dtype(emb_table.dtype).itemsize
    nbytes = seq_len * dim * itemsize  # read + write of the prefix

    return pl.pallas_call(
        _prefix_copy_kernel,
        out_shape=jax.ShapeDtypeStruct((seq_len, dim), emb_table.dtype),
        in_specs=[pl.BlockSpec(memory_space=pl.ANY)],   # table stays in HBM
        out_specs=pl.BlockSpec(memory_space=pl.ANY),    # output written directly in HBM
        scratch_shapes=[pltpu.SemaphoreType.DMA(())],
        cost_estimate=pl.CostEstimate(
            flops=0, transcendentals=0, bytes_accessed=2 * nbytes),
    )(emb_table)


if __name__ == "__main__":
    key = jax.random.PRNGKey(0)
    k_emb, k_x, k_emb2, k_x2 = jax.random.split(key, 4)

    # --- primary test: dim < 128 (narrow embedding), short sequence --------------
    dim, max_seq_len = 32, 16
    batch, seq_len = 2, 8

    emb_table = jax.random.normal(k_emb, (max_seq_len, dim), dtype=jnp.float32)
    x = jax.random.normal(k_x, (batch, seq_len, dim), dtype=jnp.float32)

    out = positional_embedding_forward(x, emb_table)
    out = jax.block_until_ready(out)

    ref = emb_table[jnp.arange(seq_len)]
    assert out.shape == (seq_len, dim)
    assert jnp.allclose(out, ref), "Pallas positional embedding mismatch (dim=32 path)"

    # --- secondary test: dim multiple of 128, longer prefix ----------------------
    dim2, max_seq_len2, seq_len2 = 128, 32, 24
    emb_table2 = jax.random.normal(k_emb2, (max_seq_len2, dim2), dtype=jnp.float32)
    x2 = jax.random.normal(k_x2, (batch, seq_len2, dim2), dtype=jnp.float32)

    out2 = positional_embedding_forward(x2, emb_table2)
    out2 = jax.block_until_ready(out2)
    ref2 = emb_table2[jnp.arange(seq_len2)]
    assert out2.shape == (seq_len2, dim2)
    assert jnp.allclose(out2, ref2), "Pallas positional embedding mismatch (dim=128 path)"

    print("KERNEL_OK")
</pallas_src>

<mosaic_0001>
module attributes {stable_mosaic.version = 11 : i64} {
  func.func @_prefix_copy_kernel(%arg0: memref<16x32xf32, #tpu.memory_space<any>>, %arg1: memref<8x32xf32, #tpu.memory_space<any>>, %arg2: memref<!tpu.dma_semaphore, #tpu.memory_space<semaphore_mem>>) attributes {dimension_semantics = [], scalar_prefetch = 0 : i64, scratch_operands = 1 : i64, tpu.core_type = #tpu.core_type<tc>} {
    %c0_i32 = arith.constant 0 : i32
    %c0_i32_0 = arith.constant 0 : i32
    %0 = tpu.memref_slice %arg0[%c0_i32, %c0_i32_0] : memref<16x32xf32, #tpu.memory_space<any>> -> memref<8x32xf32, #tpu.memory_space<any>>
    tpu.enqueue_dma source(%0 : memref<8x32xf32, #tpu.memory_space<any>>) target(%arg1 : memref<8x32xf32, #tpu.memory_space<any>>) target_semaphore(%arg2 : memref<!tpu.dma_semaphore, #tpu.memory_space<semaphore_mem>>)
    %c0_i32_1 = arith.constant 0 : i32
    %c0_i32_2 = arith.constant 0 : i32
    %1 = tpu.memref_slice %arg0[%c0_i32_1, %c0_i32_2] : memref<16x32xf32, #tpu.memory_space<any>> -> memref<8x32xf32, #tpu.memory_space<any>>
    tpu.wait_dma2 semaphore(%arg2 : memref<!tpu.dma_semaphore, #tpu.memory_space<semaphore_mem>>) src(%1 : memref<8x32xf32, #tpu.memory_space<any>>) dst(%arg1 : memref<8x32xf32, #tpu.memory_space<any>>)
    return
  }
}

</mosaic_0001>

<bundles_post_ra>
// kernel: tpu_custom_call.1
= control target key start
LH: loop header
LB: loop body
LE: loop exit
PB: predicated region body
PF: predicated region fallthrough
CT: control target
= control target key end

     0   :  { %s32_s12 = smov [#allocation2]   ;;  %s33_s13 = smov [#allocation3]   ;;  %s51_s0 = inlined_call_operand.hbm [shape: f32[16,32], index: 0, kind: input, shape index: {}]   ;;  %s52_s1 = inlined_call_operand.hbm [shape: f32[8,32], index: 1, kind: output, shape index: {}]  }
   0x1   :  { %s10_s8 = sshll.u32 %s51_s0, 4  ;;  %s12_s11 = sshll.u32 %s52_s1, 4  ;;  %s11_s8 = int_to_ptr.hbm [resolvable:$true] %s10_s8  ;;  %s13_s11 = int_to_ptr.hbm [resolvable:$true] %s12_s11 }
   0x2   :  { %s34_s14 = smov 0  }
   0x3   :  { %16 = dma.general %s11_s8, 128, %s13_s11, %s32_s12, %s33_s13, [#allocation4], %s34_s14, 0  }
   0x4   :  { %30 = dma.done.wait [#allocation2], 128 }
   0x5   :  { %31 = vsyncadd [#allocation2], 4294967168 }
   0x6   :  { %20 = vsyncmov [#allocation2] }
   0x9   :  { %s21_s15 = vpop.sfrf %20 }
   0xa   :  { %p26_p0 = scmp.ne.s32.totalorder %s21_s15, 0 }
   0xc   :  { %25 = shalt.err (%p26_p0)  }

</bundles_post_ra>
